<compile_context>
chip_gen: v6e
topology: v6e:2x2x1
jax: 0.10.0
libtpu: 0.0.40
codegen_flags: <defaults>
</compile_context>

<pallas_src>
import jax
import jax.numpy as jnp
from jax.experimental import pallas as pl
from jax.experimental.pallas import tpu as pltpu

_LANE = 128
_BF16_ROWS = 16  # bf16 packs 2 rows per sublane -> keep row tiles multiples of 16


def _round_up(x, m):
    return ((x + m - 1) // m) * m


# --------------------------------------------------------------------------- #
# Parameters (init + one-time padding, hoisted out of the per-call forward).
# --------------------------------------------------------------------------- #
def init_params(key, input_dim, output_dim, hidden_size, num_hidden_layers):
    """Deterministic init mimicking nn.Linear's U(-1/sqrt(fan_in), 1/sqrt(fan_in))."""
    params = []
    dims = [input_dim] + [hidden_size] * num_hidden_layers + [output_dim]
    for i in range(num_hidden_layers + 1):
        in_d, out_d = dims[i], dims[i + 1]
        key, kw, kb = jax.random.split(key, 3)
        bound = 1.0 / (in_d ** 0.5)
        w = jax.random.uniform(kw, (in_d, out_d), jnp.float32, -bound, bound)
        b = jax.random.uniform(kb, (out_d,), jnp.float32, -bound, bound)
        params.append((w, b))
    return params


def prepare_params(params, input_dim, compute_dtype=jnp.bfloat16):
    """One-time cast+pad of weights to MXU/lane-friendly shapes.

    params: list of (W, b) with W shaped (in_dim, out_dim) (transposed vs nn.Linear
    storage so the kernel computes x @ W + b). Call this once at parameter-load time,
    not per forward call.
    """
    dims = [input_dim] + [w.shape[1] for (w, _) in params]
    dims_pad = [_round_up(d, _LANE) for d in dims]
    weights, biases = [], []
    for li, (w, b) in enumerate(params):
        kp, np_ = dims_pad[li], dims_pad[li + 1]
        w_p = jnp.pad(w.astype(compute_dtype),
                      ((0, kp - w.shape[0]), (0, np_ - w.shape[1])))
        b_p = jnp.pad(b.astype(jnp.float32), (0, np_ - b.shape[0])).reshape(1, np_)
        weights.append(w_p)
        biases.append(b_p)
    return dict(weights=weights, biases=biases, dims=dims, dims_pad=dims_pad,
                in_dim=input_dim, out_dim=dims[-1], compute_dtype=compute_dtype)


# --------------------------------------------------------------------------- #
# Kernels.
# --------------------------------------------------------------------------- #
def _make_resident_kernel(n_layers, compute_dtype):
    """Weights arrive as VMEM blocks (constant index_map, single-buffered)."""
    def kernel(*refs):
        x_ref, o_ref = refs[0], refs[-1]
        p = refs[1:-1]                            # w0, b0, w1, b1, ...
        h = x_ref[...]                            # bf16 for the MXU
        acc = None
        for i in range(n_layers):
            w = p[2 * i][...]                     # bf16
            b = p[2 * i + 1][...]                 # f32 (1, n_pad)
            acc = jnp.dot(h, w, preferred_element_type=jnp.float32) + b
            if i < n_layers - 1:
                acc = jnp.maximum(acc, 0.0)       # ReLU in f32 on the VPU
                h = acc.astype(compute_dtype)     # Dropout(eval) == identity
        o_ref[...] = acc.astype(o_ref.dtype)
    return kernel


def _make_streamed_kernel(n_layers, compute_dtype):
    """Weights stay in HBM; manual DMAs so layer i+1's fetch overlaps layer i's matmul.

    Used when the batch grid collapses to a single step, where the BlockSpec pipeline
    has nothing to overlap and every weight DMA would otherwise be fully exposed.
    """
    def kernel(*refs):
        x_ref = refs[0]
        p_hbm = refs[1:1 + 2 * n_layers]          # w0, b0, w1, b1, ... (HBM refs)
        o_ref = refs[1 + 2 * n_layers]
        scratch = refs[2 + 2 * n_layers:]
        p_buf = scratch[:2 * n_layers]            # matching VMEM buffers
        sem = scratch[2 * n_layers]

        def copy(j):
            return pltpu.make_async_copy(p_hbm[j], p_buf[j], sem.at[j])

        # Issue every layer's weight/bias DMA up front (layer 0 finishes first).
        for j in range(2 * n_layers):
            copy(j).start()

        h = x_ref[...]
        acc = None
        for i in range(n_layers):
            copy(2 * i).wait()                    # weight for this layer
            copy(2 * i + 1).wait()                # bias for this layer
            w = p_buf[2 * i][...]
            b = p_buf[2 * i + 1][...]
            acc = jnp.dot(h, w, preferred_element_type=jnp.float32) + b
            if i < n_layers - 1:
                acc = jnp.maximum(acc, 0.0)
                h = acc.astype(compute_dtype)
        o_ref[...] = acc.astype(o_ref.dtype)
    return kernel


# --------------------------------------------------------------------------- #
# Wrapper.
# --------------------------------------------------------------------------- #
def _vmem_limit_bytes(needed):
    """Right-size the scoped-VMEM request; cap at 75% of physical capacity."""
    cap = 128 * 1024 * 1024
    try:
        cap = int(pltpu.get_tpu_info().vmem_capacity_bytes)
    except Exception:
        pass
    limit = max(int(needed * 1.25) + (8 << 20), 32 << 20)   # headroom for Mosaic scratch
    return int(min(limit, cap * 3 // 4))


def _const_weight_spec(shape):
    """Constant-index BlockSpec; single-buffered (resident weights never change)."""
    try:
        return pl.BlockSpec(shape, lambda i: (0, 0), pipeline_mode=pl.Buffered(1))
    except Exception:  # older jax without pipeline_mode / Buffered
        return pl.BlockSpec(shape, lambda i: (0, 0))


def mlp_forward(x, prepared, *, tile_b=None):
    """Forward pass of the MLP on pre-padded params from prepare_params()."""
    compute_dtype = prepared["compute_dtype"]
    ws, bs = prepared["weights"], prepared["biases"]
    dims_pad = prepared["dims_pad"]
    in_dim, out_dim = prepared["in_dim"], prepared["out_dim"]
    n_layers = len(ws)

    B = x.shape[0]
    assert x.shape[1] == in_dim
    in_pad, out_pad = dims_pad[0], dims_pad[-1]

    # Batch tile: 256 rows matches the v6e/v7x 256x256 MXU for large batches
    # (128 already saturates v5e's 4x128 MXU); never exceed the 16-rounded padded
    # batch so tiny problems run in a single grid step.
    if tile_b is None:
        tile_b = 256 if B >= 256 else 128
    tile_b = max(_BF16_ROWS, min(tile_b, _round_up(B, _BF16_ROWS)))
    b_pad = _round_up(B, tile_b)
    grid_steps = b_pad // tile_b

    # Single fused pad+cast of the activation (no zeros().at[].set() extra copy).
    x_p = jnp.pad(x.astype(compute_dtype), ((0, b_pad - B), (0, in_pad - in_dim)))

    flat = []
    for w, b in zip(ws, bs):
        flat.append(w)
        flat.append(b)

    weight_bytes = sum(int(a.size) * a.dtype.itemsize for a in flat)
    act_bytes = 2 * tile_b * (in_pad * 2 + out_pad * 4)       # double-buffered x / out
    interm_bytes = 4 * tile_b * max(dims_pad) * 4             # f32 intermediates headroom
    flops = 2 * b_pad * sum(dims_pad[i] * dims_pad[i + 1] for i in range(n_layers))
    cost = pl.CostEstimate(
        flops=int(flops),
        transcendentals=0,
        bytes_accessed=int(weight_bytes + x_p.size * 2 + b_pad * out_pad * 4),
    )

    x_spec = pl.BlockSpec((tile_b, in_pad), lambda i: (i, 0))
    out_spec = pl.BlockSpec((tile_b, out_pad), lambda i: (i, 0))   # lane-dense stores
    out_shape = jax.ShapeDtypeStruct((b_pad, out_pad), x.dtype)

    if grid_steps == 1:
        # Small-batch path: stream weights manually so each layer's fetch hides
        # under the previous layer's matmul.
        in_specs = [x_spec] + [pl.BlockSpec(memory_space=pl.ANY) for _ in flat]
        scratch = [pltpu.VMEM(a.shape, a.dtype) for a in flat]
        scratch.append(pltpu.SemaphoreType.DMA((2 * n_layers,)))
        kernel = _make_streamed_kernel(n_layers, compute_dtype)
        needed = weight_bytes + act_bytes + interm_bytes
        semantics = ("arbitrary",)
    else:
        # Multi-step path: weights DMA'd once, stay VMEM-resident, single-buffered.
        # Megacore-shard the batch axis only when each core gets several steps.
        # TODO(synk): add a K/N-tiled fallback (f32 accumulator over a contraction
        # grid axis, P3 pattern) for configs whose padded weights exceed v7x's 64 MiB.
        in_specs = [x_spec] + [_const_weight_spec(a.shape) for a in flat]
        scratch = []
        kernel = _make_resident_kernel(n_layers, compute_dtype)
        needed = 2 * weight_bytes + act_bytes + interm_bytes
        semantics = ("parallel",) if grid_steps >= 4 else ("arbitrary",)

    out_padded = pl.pallas_call(
        kernel,
        out_shape=out_shape,
        grid_spec=pltpu.PrefetchScalarGridSpec(
            num_scalar_prefetch=0,
            grid=(grid_steps,),
            in_specs=in_specs,
            out_specs=out_spec,
            scratch_shapes=scratch,
        ),
        compiler_params=pltpu.CompilerParams(
            dimension_semantics=semantics,
            vmem_limit_bytes=_vmem_limit_bytes(needed),
        ),
        cost_estimate=cost,
    )(x_p, *flat)

    return out_padded[:B, :out_dim]


# --------------------------------------------------------------------------- #
# References.
# --------------------------------------------------------------------------- #
def mlp_reference(x, params, compute_dtype=jnp.bfloat16):
    """Reference matching the kernel's numerics (bf16 MXU operands, f32 accum)."""
    h = x.astype(compute_dtype)
    for i, (w, b) in enumerate(params):
        acc = jnp.dot(h, w.astype(compute_dtype),
                      preferred_element_type=jnp.float32) + b
        if i < len(params) - 1:
            acc = jnp.maximum(acc, 0.0)
            h = acc.astype(compute_dtype)
        else:
            h = acc
    return h.astype(x.dtype)


def mlp_reference_f32(x, params):
    h = x
    for i, (w, b) in enumerate(params):
        h = h @ w + b
        if i < len(params) - 1:
            h = jnp.maximum(h, 0.0)
    return h


if __name__ == "__main__":
    # Small shapes consistent with the module's defaults.
    batch = 16
    input_dim = 32
    output_dim = 4
    hidden_size = 128
    num_hidden_layers = 3

    key = jax.random.PRNGKey(0)
    key, kx = jax.random.split(key)
    x = jax.random.normal(kx, (batch, input_dim), jnp.float32)

    params = init_params(key, input_dim, output_dim, hidden_size, num_hidden_layers)
    prepared = prepare_params(params, input_dim)   # one-time weight cast/pad

    # Small-batch (single grid step, streamed-weights) path.
    out = jax.block_until_ready(mlp_forward(x, prepared))
    assert out.shape == (batch, output_dim)
    ref = mlp_reference(x, params)
    assert jnp.allclose(out, ref, atol=1e-2, rtol=1e-2), "mismatch vs matched reference"
    ref32 = mlp_reference_f32(x, params)
    assert jnp.allclose(out, ref32, atol=5e-2, rtol=5e-2), "mismatch vs f32 reference"

    # Larger batch exercises the multi-step, VMEM-resident-weights path (grid >= 4).
    key, kx2 = jax.random.split(key)
    x_big = jax.random.normal(kx2, (1024, input_dim), jnp.float32)
    out_big = jax.block_until_ready(mlp_forward(x_big, prepared))
    assert out_big.shape == (1024, output_dim)
    ref_big = mlp_reference(x_big, params)
    assert jnp.allclose(out_big, ref_big, atol=1e-2, rtol=1e-2), "mismatch (big batch)"

    print("KERNEL_OK")
</pallas_src>

<mosaic_0001>
module attributes {stable_mosaic.version = 11 : i64} {
  func.func @kernel(%arg0: i32, %arg1: memref<16x128xbf16, #tpu.memory_space<vmem>>, %arg2: memref<128x128xbf16, #tpu.memory_space<any>>, %arg3: memref<1x128xf32, #tpu.memory_space<any>>, %arg4: memref<128x128xbf16, #tpu.memory_space<any>>, %arg5: memref<1x128xf32, #tpu.memory_space<any>>, %arg6: memref<128x128xbf16, #tpu.memory_space<any>>, %arg7: memref<1x128xf32, #tpu.memory_space<any>>, %arg8: memref<128x128xbf16, #tpu.memory_space<any>>, %arg9: memref<1x128xf32, #tpu.memory_space<any>>, %arg10: memref<16x128xf32, #tpu.memory_space<vmem>>, %arg11: memref<128x128xbf16, #tpu.memory_space<vmem>>, %arg12: memref<1x128xf32, #tpu.memory_space<vmem>>, %arg13: memref<128x128xbf16, #tpu.memory_space<vmem>>, %arg14: memref<1x128xf32, #tpu.memory_space<vmem>>, %arg15: memref<128x128xbf16, #tpu.memory_space<vmem>>, %arg16: memref<1x128xf32, #tpu.memory_space<vmem>>, %arg17: memref<128x128xbf16, #tpu.memory_space<vmem>>, %arg18: memref<1x128xf32, #tpu.memory_space<vmem>>, %arg19: memref<8x!tpu.dma_semaphore, #tpu.memory_space<semaphore_mem>>) attributes {dimension_semantics = [#tpu.dimension_semantics<arbitrary>], iteration_bounds = array<i64: 1>, scalar_prefetch = 0 : i64, scratch_operands = 9 : i64, tpu.core_type = #tpu.core_type<tc>, window_params = [{transform_indices = @transform_0, window_bounds = array<i64: 16, 128>}, {}, {}, {}, {}, {}, {}, {}, {}, {transform_indices = @transform_9, window_bounds = array<i64: 16, 128>}]} {
    %c0_i32 = arith.constant 0 : i32
    %0 = tpu.memref_slice %arg19[%c0_i32] : memref<8x!tpu.dma_semaphore, #tpu.memory_space<semaphore_mem>> -> memref<1x!tpu.dma_semaphore, #tpu.memory_space<semaphore_mem>>
    %1 = tpu.memref_squeeze %0 : memref<1x!tpu.dma_semaphore, #tpu.memory_space<semaphore_mem>> -> memref<!tpu.dma_semaphore, #tpu.memory_space<semaphore_mem>>
    tpu.enqueue_dma source(%arg2 : memref<128x128xbf16, #tpu.memory_space<any>>) target(%arg11 : memref<128x128xbf16, #tpu.memory_space<vmem>>) target_semaphore(%1 : memref<!tpu.dma_semaphore, #tpu.memory_space<semaphore_mem>>)
    %c1_i32 = arith.constant 1 : i32
    %2 = tpu.memref_slice %arg19[%c1_i32] : memref<8x!tpu.dma_semaphore, #tpu.memory_space<semaphore_mem>> -> memref<1x!tpu.dma_semaphore, #tpu.memory_space<semaphore_mem>>
    %3 = tpu.memref_squeeze %2 : memref<1x!tpu.dma_semaphore, #tpu.memory_space<semaphore_mem>> -> memref<!tpu.dma_semaphore, #tpu.memory_space<semaphore_mem>>
    tpu.enqueue_dma source(%arg3 : memref<1x128xf32, #tpu.memory_space<any>>) target(%arg12 : memref<1x128xf32, #tpu.memory_space<vmem>>) target_semaphore(%3 : memref<!tpu.dma_semaphore, #tpu.memory_space<semaphore_mem>>)
    %c2_i32 = arith.constant 2 : i32
    %4 = tpu.memref_slice %arg19[%c2_i32] : memref<8x!tpu.dma_semaphore, #tpu.memory_space<semaphore_mem>> -> memref<1x!tpu.dma_semaphore, #tpu.memory_space<semaphore_mem>>
    %5 = tpu.memref_squeeze %4 : memref<1x!tpu.dma_semaphore, #tpu.memory_space<semaphore_mem>> -> memref<!tpu.dma_semaphore, #tpu.memory_space<semaphore_mem>>
    tpu.enqueue_dma source(%arg4 : memref<128x128xbf16, #tpu.memory_space<any>>) target(%arg13 : memref<128x128xbf16, #tpu.memory_space<vmem>>) target_semaphore(%5 : memref<!tpu.dma_semaphore, #tpu.memory_space<semaphore_mem>>)
    %c3_i32 = arith.constant 3 : i32
    %6 = tpu.memref_slice %arg19[%c3_i32] : memref<8x!tpu.dma_semaphore, #tpu.memory_space<semaphore_mem>> -> memref<1x!tpu.dma_semaphore, #tpu.memory_space<semaphore_mem>>
    %7 = tpu.memref_squeeze %6 : memref<1x!tpu.dma_semaphore, #tpu.memory_space<semaphore_mem>> -> memref<!tpu.dma_semaphore, #tpu.memory_space<semaphore_mem>>
    tpu.enqueue_dma source(%arg5 : memref<1x128xf32, #tpu.memory_space<any>>) target(%arg14 : memref<1x128xf32, #tpu.memory_space<vmem>>) target_semaphore(%7 : memref<!tpu.dma_semaphore, #tpu.memory_space<semaphore_mem>>)
    %c4_i32 = arith.constant 4 : i32
    %8 = tpu.memref_slice %arg19[%c4_i32] : memref<8x!tpu.dma_semaphore, #tpu.memory_space<semaphore_mem>> -> memref<1x!tpu.dma_semaphore, #tpu.memory_space<semaphore_mem>>
    %9 = tpu.memref_squeeze %8 : memref<1x!tpu.dma_semaphore, #tpu.memory_space<semaphore_mem>> -> memref<!tpu.dma_semaphore, #tpu.memory_space<semaphore_mem>>
    tpu.enqueue_dma source(%arg6 : memref<128x128xbf16, #tpu.memory_space<any>>) target(%arg15 : memref<128x128xbf16, #tpu.memory_space<vmem>>) target_semaphore(%9 : memref<!tpu.dma_semaphore, #tpu.memory_space<semaphore_mem>>)
    %c5_i32 = arith.constant 5 : i32
    %10 = tpu.memref_slice %arg19[%c5_i32] : memref<8x!tpu.dma_semaphore, #tpu.memory_space<semaphore_mem>> -> memref<1x!tpu.dma_semaphore, #tpu.memory_space<semaphore_mem>>
    %11 = tpu.memref_squeeze %10 : memref<1x!tpu.dma_semaphore, #tpu.memory_space<semaphore_mem>> -> memref<!tpu.dma_semaphore, #tpu.memory_space<semaphore_mem>>
    tpu.enqueue_dma source(%arg7 : memref<1x128xf32, #tpu.memory_space<any>>) target(%arg16 : memref<1x128xf32, #tpu.memory_space<vmem>>) target_semaphore(%11 : memref<!tpu.dma_semaphore, #tpu.memory_space<semaphore_mem>>)
    %c6_i32 = arith.constant 6 : i32
    %12 = tpu.memref_slice %arg19[%c6_i32] : memref<8x!tpu.dma_semaphore, #tpu.memory_space<semaphore_mem>> -> memref<1x!tpu.dma_semaphore, #tpu.memory_space<semaphore_mem>>
    %13 = tpu.memref_squeeze %12 : memref<1x!tpu.dma_semaphore, #tpu.memory_space<semaphore_mem>> -> memref<!tpu.dma_semaphore, #tpu.memory_space<semaphore_mem>>
    tpu.enqueue_dma source(%arg8 : memref<128x128xbf16, #tpu.memory_space<any>>) target(%arg17 : memref<128x128xbf16, #tpu.memory_space<vmem>>) target_semaphore(%13 : memref<!tpu.dma_semaphore, #tpu.memory_space<semaphore_mem>>)
    %c7_i32 = arith.constant 7 : i32
    %14 = tpu.memref_slice %arg19[%c7_i32] : memref<8x!tpu.dma_semaphore, #tpu.memory_space<semaphore_mem>> -> memref<1x!tpu.dma_semaphore, #tpu.memory_space<semaphore_mem>>
    %15 = tpu.memref_squeeze %14 : memref<1x!tpu.dma_semaphore, #tpu.memory_space<semaphore_mem>> -> memref<!tpu.dma_semaphore, #tpu.memory_space<semaphore_mem>>
    tpu.enqueue_dma source(%arg9 : memref<1x128xf32, #tpu.memory_space<any>>) target(%arg18 : memref<1x128xf32, #tpu.memory_space<vmem>>) target_semaphore(%15 : memref<!tpu.dma_semaphore, #tpu.memory_space<semaphore_mem>>)
    %c0 = arith.constant 0 : index
    %c0_0 = arith.constant 0 : index
    %16 = vector.load %arg1[%c0, %c0_0] : memref<16x128xbf16, #tpu.memory_space<vmem>>, vector<16x128xbf16>
    %c0_i32_1 = arith.constant 0 : i32
    %17 = tpu.memref_slice %arg19[%c0_i32_1] : memref<8x!tpu.dma_semaphore, #tpu.memory_space<semaphore_mem>> -> memref<1x!tpu.dma_semaphore, #tpu.memory_space<semaphore_mem>>
    %18 = tpu.memref_squeeze %17 : memref<1x!tpu.dma_semaphore, #tpu.memory_space<semaphore_mem>> -> memref<!tpu.dma_semaphore, #tpu.memory_space<semaphore_mem>>
    tpu.wait_dma2 semaphore(%18 : memref<!tpu.dma_semaphore, #tpu.memory_space<semaphore_mem>>) src(%arg2 : memref<128x128xbf16, #tpu.memory_space<any>>) dst(%arg11 : memref<128x128xbf16, #tpu.memory_space<vmem>>)
    %c1_i32_2 = arith.constant 1 : i32
    %19 = tpu.memref_slice %arg19[%c1_i32_2] : memref<8x!tpu.dma_semaphore, #tpu.memory_space<semaphore_mem>> -> memref<1x!tpu.dma_semaphore, #tpu.memory_space<semaphore_mem>>
    %20 = tpu.memref_squeeze %19 : memref<1x!tpu.dma_semaphore, #tpu.memory_space<semaphore_mem>> -> memref<!tpu.dma_semaphore, #tpu.memory_space<semaphore_mem>>
    tpu.wait_dma2 semaphore(%20 : memref<!tpu.dma_semaphore, #tpu.memory_space<semaphore_mem>>) src(%arg3 : memref<1x128xf32, #tpu.memory_space<any>>) dst(%arg12 : memref<1x128xf32, #tpu.memory_space<vmem>>)
    %c0_3 = arith.constant 0 : index
    %c0_4 = arith.constant 0 : index
    %21 = vector.load %arg11[%c0_3, %c0_4] : memref<128x128xbf16, #tpu.memory_space<vmem>>, vector<128x128xbf16>
    %c0_5 = arith.constant 0 : index
    %c0_6 = arith.constant 0 : index
    %22 = vector.load %arg12[%c0_5, %c0_6] : memref<1x128xf32, #tpu.memory_space<vmem>>, vector<1x128xf32>
    %cst = arith.constant dense<0.000000e+00> : vector<16x128xf32>
    %23 = tpu.matmul %16, %21, %cst {dimension_numbers = #tpu.dot_dimension_numbers<[1], [0], [0], [1], [0, 0, 1, 1], [], []>} : vector<16x128xbf16>, vector<128x128xbf16>, vector<16x128xf32> -> vector<16x128xf32>
    %24 = vector.broadcast %22 : vector<1x128xf32> to vector<16x128xf32>
    %25 = arith.addf %23, %24 : vector<16x128xf32>
    %cst_7 = arith.constant 0.000000e+00 : f32
    %26 = vector.broadcast %cst_7 : f32 to vector<16x128xf32>
    %27 = arith.maximumf %25, %26 : vector<16x128xf32>
    %28 = arith.truncf %27 : vector<16x128xf32> to vector<16x128xbf16>
    %c2_i32_8 = arith.constant 2 : i32
    %29 = tpu.memref_slice %arg19[%c2_i32_8] : memref<8x!tpu.dma_semaphore, #tpu.memory_space<semaphore_mem>> -> memref<1x!tpu.dma_semaphore, #tpu.memory_space<semaphore_mem>>
    %30 = tpu.memref_squeeze %29 : memref<1x!tpu.dma_semaphore, #tpu.memory_space<semaphore_mem>> -> memref<!tpu.dma_semaphore, #tpu.memory_space<semaphore_mem>>
    tpu.wait_dma2 semaphore(%30 : memref<!tpu.dma_semaphore, #tpu.memory_space<semaphore_mem>>) src(%arg4 : memref<128x128xbf16, #tpu.memory_space<any>>) dst(%arg13 : memref<128x128xbf16, #tpu.memory_space<vmem>>)
    %c3_i32_9 = arith.constant 3 : i32
    %31 = tpu.memref_slice %arg19[%c3_i32_9] : memref<8x!tpu.dma_semaphore, #tpu.memory_space<semaphore_mem>> -> memref<1x!tpu.dma_semaphore, #tpu.memory_space<semaphore_mem>>
    %32 = tpu.memref_squeeze %31 : memref<1x!tpu.dma_semaphore, #tpu.memory_space<semaphore_mem>> -> memref<!tpu.dma_semaphore, #tpu.memory_space<semaphore_mem>>
    tpu.wait_dma2 semaphore(%32 : memref<!tpu.dma_semaphore, #tpu.memory_space<semaphore_mem>>) src(%arg5 : memref<1x128xf32, #tpu.memory_space<any>>) dst(%arg14 : memref<1x128xf32, #tpu.memory_space<vmem>>)
    %c0_10 = arith.constant 0 : index
    %c0_11 = arith.constant 0 : index
    %33 = vector.load %arg13[%c0_10, %c0_11] : memref<128x128xbf16, #tpu.memory_space<vmem>>, vector<128x128xbf16>
    %c0_12 = arith.constant 0 : index
    %c0_13 = arith.constant 0 : index
    %34 = vector.load %arg14[%c0_12, %c0_13] : memref<1x128xf32, #tpu.memory_space<vmem>>, vector<1x128xf32>
    %cst_14 = arith.constant dense<0.000000e+00> : vector<16x128xf32>
    %35 = tpu.matmul %28, %33, %cst_14 {dimension_numbers = #tpu.dot_dimension_numbers<[1], [0], [0], [1], [0, 0, 1, 1], [], []>} : vector<16x128xbf16>, vector<128x128xbf16>, vector<16x128xf32> -> vector<16x128xf32>
    %36 = vector.broadcast %34 : vector<1x128xf32> to vector<16x128xf32>
    %37 = arith.addf %35, %36 : vector<16x128xf32>
    %cst_15 = arith.constant 0.000000e+00 : f32
    %38 = vector.broadcast %cst_15 : f32 to vector<16x128xf32>
    %39 = arith.maximumf %37, %38 : vector<16x128xf32>
    %40 = arith.truncf %39 : vector<16x128xf32> to vector<16x128xbf16>
    %c4_i32_16 = arith.constant 4 : i32
    %41 = tpu.memref_slice %arg19[%c4_i32_16] : memref<8x!tpu.dma_semaphore, #tpu.memory_space<semaphore_mem>> -> memref<1x!tpu.dma_semaphore, #tpu.memory_space<semaphore_mem>>
    %42 = tpu.memref_squeeze %41 : memref<1x!tpu.dma_semaphore, #tpu.memory_space<semaphore_mem>> -> memref<!tpu.dma_semaphore, #tpu.memory_space<semaphore_mem>>
    tpu.wait_dma2 semaphore(%42 : memref<!tpu.dma_semaphore, #tpu.memory_space<semaphore_mem>>) src(%arg6 : memref<128x128xbf16, #tpu.memory_space<any>>) dst(%arg15 : memref<128x128xbf16, #tpu.memory_space<vmem>>)
    %c5_i32_17 = arith.constant 5 : i32
    %43 = tpu.memref_slice %arg19[%c5_i32_17] : memref<8x!tpu.dma_semaphore, #tpu.memory_space<semaphore_mem>> -> memref<1x!tpu.dma_semaphore, #tpu.memory_space<semaphore_mem>>
    %44 = tpu.memref_squeeze %43 : memref<1x!tpu.dma_semaphore, #tpu.memory_space<semaphore_mem>> -> memref<!tpu.dma_semaphore, #tpu.memory_space<semaphore_mem>>
    tpu.wait_dma2 semaphore(%44 : memref<!tpu.dma_semaphore, #tpu.memory_space<semaphore_mem>>) src(%arg7 : memref<1x128xf32, #tpu.memory_space<any>>) dst(%arg16 : memref<1x128xf32, #tpu.memory_space<vmem>>)
    %c0_18 = arith.constant 0 : index
    %c0_19 = arith.constant 0 : index
    %45 = vector.load %arg15[%c0_18, %c0_19] : memref<128x128xbf16, #tpu.memory_space<vmem>>, vector<128x128xbf16>
    %c0_20 = arith.constant 0 : index
    %c0_21 = arith.constant 0 : index
    %46 = vector.load %arg16[%c0_20, %c0_21] : memref<1x128xf32, #tpu.memory_space<vmem>>, vector<1x128xf32>
    %cst_22 = arith.constant dense<0.000000e+00> : vector<16x128xf32>
    %47 = tpu.matmul %40, %45, %cst_22 {dimension_numbers = #tpu.dot_dimension_numbers<[1], [0], [0], [1], [0, 0, 1, 1], [], []>} : vector<16x128xbf16>, vector<128x128xbf16>, vector<16x128xf32> -> vector<16x128xf32>
    %48 = vector.broadcast %46 : vector<1x128xf32> to vector<16x128xf32>
    %49 = arith.addf %47, %48 : vector<16x128xf32>
    %cst_23 = arith.constant 0.000000e+00 : f32
    %50 = vector.broadcast %cst_23 : f32 to vector<16x128xf32>
    %51 = arith.maximumf %49, %50 : vector<16x128xf32>
    %52 = arith.truncf %51 : vector<16x128xf32> to vector<16x128xbf16>
    %c6_i32_24 = arith.constant 6 : i32
    %53 = tpu.memref_slice %arg19[%c6_i32_24] : memref<8x!tpu.dma_semaphore, #tpu.memory_space<semaphore_mem>> -> memref<1x!tpu.dma_semaphore, #tpu.memory_space<semaphore_mem>>
    %54 = tpu.memref_squeeze %53 : memref<1x!tpu.dma_semaphore, #tpu.memory_space<semaphore_mem>> -> memref<!tpu.dma_semaphore, #tpu.memory_space<semaphore_mem>>
    tpu.wait_dma2 semaphore(%54 : memref<!tpu.dma_semaphore, #tpu.memory_space<semaphore_mem>>) src(%arg8 : memref<128x128xbf16, #tpu.memory_space<any>>) dst(%arg17 : memref<128x128xbf16, #tpu.memory_space<vmem>>)
    %c7_i32_25 = arith.constant 7 : i32
    %55 = tpu.memref_slice %arg19[%c7_i32_25] : memref<8x!tpu.dma_semaphore, #tpu.memory_space<semaphore_mem>> -> memref<1x!tpu.dma_semaphore, #tpu.memory_space<semaphore_mem>>
    %56 = tpu.memref_squeeze %55 : memref<1x!tpu.dma_semaphore, #tpu.memory_space<semaphore_mem>> -> memref<!tpu.dma_semaphore, #tpu.memory_space<semaphore_mem>>
    tpu.wait_dma2 semaphore(%56 : memref<!tpu.dma_semaphore, #tpu.memory_space<semaphore_mem>>) src(%arg9 : memref<1x128xf32, #tpu.memory_space<any>>) dst(%arg18 : memref<1x128xf32, #tpu.memory_space<vmem>>)
    %c0_26 = arith.constant 0 : index
    %c0_27 = arith.constant 0 : index
    %57 = vector.load %arg17[%c0_26, %c0_27] : memref<128x128xbf16, #tpu.memory_space<vmem>>, vector<128x128xbf16>
    %c0_28 = arith.constant 0 : index
    %c0_29 = arith.constant 0 : index
    %58 = vector.load %arg18[%c0_28, %c0_29] : memref<1x128xf32, #tpu.memory_space<vmem>>, vector<1x128xf32>
    %cst_30 = arith.constant dense<0.000000e+00> : vector<16x128xf32>
    %59 = tpu.matmul %52, %57, %cst_30 {dimension_numbers = #tpu.dot_dimension_numbers<[1], [0], [0], [1], [0, 0, 1, 1], [], []>} : vector<16x128xbf16>, vector<128x128xbf16>, vector<16x128xf32> -> vector<16x128xf32>
    %60 = vector.broadcast %58 : vector<1x128xf32> to vector<16x128xf32>
    %61 = arith.addf %59, %60 : vector<16x128xf32>
    %c0_31 = arith.constant 0 : index
    %c0_32 = arith.constant 0 : index
    %62 = vector.load %arg10[%c0_31, %c0_32] : memref<16x128xf32, #tpu.memory_space<vmem>>, vector<16x128xf32>
    tpu.vector_store %arg10[%c0_31, %c0_32], %61 {strides = array<i32>} : memref<16x128xf32, #tpu.memory_space<vmem>>, vector<16x128xf32>,
    return
  }
  func.func @transform_0(%arg0: i32) -> (i32, i32) {
    %c0_i32 = arith.constant 0 : i32
    %c0_i32_0 = arith.constant 0 : i32
    return %arg0, %c0_i32 : i32, i32
  }
  func.func @transform_9(%arg0: i32) -> (i32, i32) {
    %c0_i32 = arith.constant 0 : i32
    %c0_i32_0 = arith.constant 0 : i32
    return %arg0, %c0_i32 : i32, i32
  }
}

</mosaic_0001>

<bundles_post_ra>
// kernel: tpu_custom_call.1
= control target key start
LH: loop header
LB: loop body
LE: loop exit
PB: predicated region body
PF: predicated region fallthrough
CT: control target
= control target key end

     0   :  { %14 = vsyncpa [#allocation12], 0  ;;  %s1342_s0 = inlined_call_operand.hbm [shape: bf16[16,128], index: 0, kind: input, shape index: {}]   ;;  %s1343_s1 = inlined_call_operand.hbm [shape: bf16[128,128], index: 1, kind: input, shape index: {}]   ;;  %s1344_s2 = inlined_call_operand.vmem [shape: f32[1,128], index: 2, kind: input, shape index: {}]   ;;  %s1345_s3 = inlined_call_operand.hbm [shape: bf16[128,128], index: 3, kind: input, shape index: {}]   ;;  %s1346_s4 = inlined_call_operand.vmem [shape: f32[1,128], index: 4, kind: input, shape index: {}]   ;;  %s1347_s5 = inlined_call_operand.hbm [shape: bf16[128,128], index: 5, kind: input, shape index: {}]   ;;  %s1348_s6 = inlined_call_operand.vmem [shape: f32[1,128], index: 6, kind: input, shape index: {}]   ;;  %s1349_s7 = inlined_call_operand.hbm [shape: bf16[128,128], index: 7, kind: input, shape index: {}]   ;;  %s1350_s8 = inlined_call_operand.vmem [shape: f32[1,128], index: 8, kind: input, shape index: {}]   ;;  %s1351_s9 = inlined_call_operand.hbm [shape: f32[16,128], index: 9, kind: output, shape index: {}]  }
   0x1   :  { %15 = vsyncpa [#allocation13], 0  ;;  %s1210_s30 = smov [#allocation11]  }
   0x2   :  { %s21_s10 = sshll.u32 %s1210_s30, 4  ;;  %s22_s10 = int_to_ptr.vmem [resolvable:$true] %s21_s10 }
   0x3   :  { %s1078_s11 = scalar_lea.vmem %s22_s10, 128  ;;  %p1083_p1 = scmp.lt.s32.totalorder %s22_s10, %s22_s10 }
   0x4   :  { %p1079_p0 = scmp.ne.s32.totalorder %s22_s10, %s1078_s11  ;;  %p1084_p2 = scmp.lt.s32.totalorder %s1078_s11, %s1078_s11 }
   0x6   :  { %p1085_p3 = por %p1084_p2, %p1083_p1 }
   0x8   :  { %p1086_p4 = pnand %p1085_p3, %p1079_p0 }
   0xa   :  { %1089 = shalt.err (!%p1086_p4)
}
   0xb   :  { %s1211_s12 = smov 64   ;;  %s1212_s13 = smov 4  }
   0xc   :  { %27 = dma.hbm_to_vmem [thread:$0]  %s1342_s0, 128, %s22_s10, [#allocation12], %s1211_s12, %s1211_s12, %s1212_s13  }
   0xd   :  { %1190 = dma.done.wait [#allocation12], 128  }
   0xe   :  { %1191 = vsyncadd [#allocation12], 4294967168  ;;  %s1213_s16 = smov [#allocation2]  }
   0xf   :  { %s39_s17 = sshll.u32 %s1213_s16, 4  ;;  %s40_s17 = int_to_ptr.vmem [resolvable:$true] %s39_s17 }
  0x10   :  { %s1098_s18 = scalar_lea.vmem %s40_s17, 1024  ;;  %p1103_p6 = scmp.lt.s32.totalorder %s40_s17, %s40_s17 }
  0x11   :  { %p1099_p5 = scmp.ne.s32.totalorder %s40_s17, %s1098_s18  ;;  %p1104_p7 = scmp.lt.s32.totalorder %s1098_s18, %s1098_s18 }
  0x13   :  { %p1105_p8 = por %p1104_p7, %p1103_p6 }
  0x15   :  { %p1106_p9 = pnand %p1105_p8, %p1099_p5 }
  0x17   :  { %1109 = shalt.err (!%p1106_p9)  }
  0x18   :  { %42 = dma.hbm_to_vmem [thread:$0]  %s1343_s1, 1024, %s40_s17, [#allocation10]  ;;  %v62_v0 = vld [vmem:[%s1344_s2] sm:$0x1] }
  0x19   :  { %63 = vst [vmem:[#allocation3] sm:$0x1] %v62_v0 }
  0x1a   :  { %89 = vsyncadd [#allocation10 + $0x1], 16  ;;  %v121_v1 = vld [vmem:[%s1346_s4] sm:$0x1]  ;;  %s1214_s24 = smov [#allocation4]  }
  0x1b   :  { %s98_s25 = sshll.u32 %s1214_s24, 4  ;;  %122 = vst [vmem:[#allocation5] sm:$0x1] %v121_v1  ;;  %s99_s25 = int_to_ptr.vmem [resolvable:$true] %s98_s25 }
  0x1c   :  { %s1118_s26 = scalar_lea.vmem %s99_s25, 1024  ;;  %p1123_p11 = scmp.lt.s32.totalorder %s99_s25, %s99_s25 }
  0x1d   :  { %p1119_p10 = scmp.ne.s32.totalorder %s99_s25, %s1118_s26  ;;  %p1124_p12 = scmp.lt.s32.totalorder %s1118_s26, %s1118_s26 }
  0x1f   :  { %p1125_p13 = por %p1124_p12, %p1123_p11 }
  0x21   :  { %p1126_p0 = pnand %p1125_p13, %p1119_p10 }
  0x23   :  { %1129 = shalt.err (!%p1126_p0)  }
  0x24   :  { %101 = dma.hbm_to_vmem [thread:$0]  %s1345_s3, 1024, %s99_s25, [#allocation10 + $0x2] }
  0x25   :  { %148 = vsyncadd [#allocation10 + $0x3], 16  ;;  %v180_v2 = vld [vmem:[%s1348_s6] sm:$0x1]  ;;  %s1215_s4 = smov [#allocation6]  }
  0x26   :  { %s157_s29 = sshll.u32 %s1215_s4, 4  ;;  %181 = vst [vmem:[#allocation7] sm:$0x1] %v180_v2  ;;  %s158_s29 = int_to_ptr.vmem [resolvable:$true] %s157_s29 }
  0x27   :  { %s1138_s30 = scalar_lea.vmem %s158_s29, 1024  ;;  %p1143_p2 = scmp.lt.s32.totalorder %s158_s29, %s158_s29 }
  0x28   :  { %p1139_p1 = scmp.ne.s32.totalorder %s158_s29, %s1138_s30  ;;  %p1144_p3 = scmp.lt.s32.totalorder %s1138_s30, %s1138_s30 }
  0x2a   :  { %p1145_p4 = por %p1144_p3, %p1143_p2 }
  0x2c   :  { %p1146_p5 = pnand %p1145_p4, %p1139_p1 }
  0x2e   :  { %1149 = shalt.err (!%p1146_p5)  }
  0x2f   :  { %160 = dma.hbm_to_vmem [thread:$0]  %s1347_s5, 1024, %s158_s29, [#allocation10 + $0x4] }
  0x30   :  { %207 = vsyncadd [#allocation10 + $0x5], 16  ;;  %v239_v3 = vld [vmem:[%s1350_s8] sm:$0x1]  ;;  %s1216_s6 = smov [#allocation8]  }
  0x31   :  { %s216_s13 = sshll.u32 %s1216_s6, 4  ;;  %240 = vst [vmem:[#allocation9] sm:$0x1] %v239_v3  ;;  %s217_s13 = int_to_ptr.vmem [resolvable:$true] %s216_s13 }
  0x32   :  { %s1158_s14 = scalar_lea.vmem %s217_s13, 1024  ;;  %p1163_p7 = scmp.lt.s32.totalorder %s217_s13, %s217_s13 }
  0x33   :  { %p1159_p6 = scmp.ne.s32.totalorder %s217_s13, %s1158_s14  ;;  %p1164_p8 = scmp.lt.s32.totalorder %s1158_s14, %s1158_s14 }
  0x35   :  { %p1165_p9 = por %p1164_p8, %p1163_p7 }
  0x37   :  { %p1166_p10 = pnand %p1165_p9, %p1159_p6 }
  0x39   :  { %1169 = shalt.err (!%p1166_p10)  }
  0x3a   :  { %219 = dma.hbm_to_vmem [thread:$0]  %s1349_s7, 1024, %s217_s13, [#allocation10 + $0x6] }
  0x3b   :  { %266 = vsyncadd [#allocation10 + $0x7], 16  ;;  %v267_v4 = vld [vmem:[#allocation11] sm:$0xf]  ;;  %v268_v5 = vld [vmem:[#allocation11 + $0x4] sm:$0xf] }
  0x3c   :  { %1192 = dma.done.wait [#allocation10], 1024 }
  0x3d   :  { %1193 = vsyncadd [#allocation10], 4294966272 }
  0x3e   :  { %1194 = dma.done.wait [#allocation10 + $0x1], 16 }
  0x3f   :  { %1195 = vsyncadd [#allocation10 + $0x1], 4294967280  ;;  %v1217_v6 = vmov 0.0   ;;  %vm1218_vm0 = vmmov 0   ;;  %v1038_v7 = vld [vmem:[#allocation2 + $0x38] sm:$0xff]   ;;  %v1039_v8 = vld [vmem:[#allocation2 + $0x30] sm:$0xff]   ;;  %v866_v15 = vcombine.low %v267_v4, %v268_v5 }
  0x40   :  { %946 = vmatprep.subr.bf16.mxu0 %v1217_v6  ;;  %962 = vmatprep.mubr.msk.bf16.mxu0 %vm1218_vm0, %v1217_v6  ;;  %v1040_v9 = vld [vmem:[#allocation2 + $0x28] sm:$0xff]   ;;  %v1041_v10 = vld [vmem:[#allocation2 + $0x20] sm:$0xff]   ;;  %v1042_v11 = vld [vmem:[#allocation2 + $0x18] sm:$0xff]  }
  0x41   :  { %947 = vmatpush3.bf16.msra.mxu0 %v1038_v7  ;;  %v1043_v12 = vld [vmem:[#allocation2 + $0x10] sm:$0xff]   ;;  %v1044_v13 = vld [vmem:[#allocation2 + $0x8] sm:$0xff]   ;;  %v1045_v14 = vld [vmem:[#allocation2] sm:$0xff]  }
  0x42   :  { %948 = vmatprep.subr.bf16.mxu0 %v1217_v6  ;;  %v865_v16 = vld [vmem:[#allocation3] ss:$0 sm:$0xff] }
  0x45   :  { %949 = vmatpush3.bf16.msra.mxu0 %v1039_v8 }
  0x46   :  { %950 = vmatprep.subr.bf16.mxu0 %v1217_v6 }
  0x49   :  { %951 = vmatpush3.bf16.msra.mxu0 %v1040_v9 }
  0x4a   :  { %952 = vmatprep.subr.bf16.mxu0 %v1217_v6 }
  0x4d   :  { %953 = vmatpush3.bf16.msra.mxu0 %v1041_v10 }
  0x4e   :  { %954 = vmatprep.subr.bf16.mxu0 %v1217_v6 }
  0x51   :  { %955 = vmatpush3.bf16.msra.mxu0 %v1042_v11 }
  0x52   :  { %956 = vmatprep.subr.bf16.mxu0 %v1217_v6 }
  0x55   :  { %957 = vmatpush3.bf16.msra.mxu0 %v1043_v12 }
  0x56   :  { %958 = vmatprep.subr.bf16.mxu0 %v1217_v6 }
  0x59   :  { %959 = vmatpush3.bf16.msra.mxu0 %v1044_v13 }
  0x5a   :  { %960 = vmatprep.subr.bf16.mxu0 %v1217_v6 }
  0x5d   :  { %961 = vmatpush3.bf16.msra.mxu0 %v1045_v14 }
  0x60   :  { %963 = vmatmul.mubr.bf16.vlgmr.msra.gmra.mxu0 %v866_v15 }
 0x120   :  { %v387_v17 = vpop.f32.mrf.mxu0 }
 0x121   :  { %v388_v19 = vadd.f32 %v865_v16, %v387_v17 }
 0x122   :  { %v964_v18 = vpop.f32.mrf.mxu0 }
 0x123   :  { %v394_v23 = vmax.f32 %v388_v19, 0.0 }
 0x124   :  { %v390_v20 = vpop.f32.mrf.mxu0 }
 0x125   :  { %v391_v21 = vadd.f32 %v865_v16, %v390_v20 }
 0x126   :  { %v965_v22 = vpop.f32.mrf.mxu0 }
 0x127   :  { %v395_v24 = vmax.f32 %v391_v21, 0.0 }
 0x129   :  { %v396_v25 = vpack.c.bf16 %v395_v24, %v394_v23 }
 0x12a   :  { %1196 = dma.done.wait [#allocation10 + $0x2], 1024 }
 0x12b   :  { %1197 = vsyncadd [#allocation10 + $0x2], 4294966272 }
 0x12c   :  { %1198 = dma.done.wait [#allocation10 + $0x3], 16 }
 0x12d   :  { %1199 = vsyncadd [#allocation10 + $0x3], 4294967280  ;;  %966 = vmatprep.subr.bf16.mxu1 %v1217_v6  ;;  %982 = vmatprep.mubr.msk.bf16.mxu1 %vm1218_vm0, %v1217_v6  ;;  %v1046_v26 = vld [vmem:[#allocation4 + $0x38] sm:$0xff]   ;;  %v1047_v27 = vld [vmem:[#allocation4 + $0x30] sm:$0xff]  }
 0x12e   :  { %967 = vmatpush3.bf16.msra.mxu1 %v1046_v26  ;;  %v1048_v28 = vld [vmem:[#allocation4 + $0x28] sm:$0xff]   ;;  %v1049_v29 = vld [vmem:[#allocation4 + $0x20] sm:$0xff]   ;;  %v1050_v30 = vld [vmem:[#allocation4 + $0x18] sm:$0xff]  }
 0x12f   :  { %968 = vmatprep.subr.bf16.mxu1 %v1217_v6  ;;  %v1051_v31 = vld [vmem:[#allocation4 + $0x10] sm:$0xff]   ;;  %v1052_v32 = vld [vmem:[#allocation4 + $0x8] sm:$0xff]   ;;  %v1053_v33 = vld [vmem:[#allocation4] sm:$0xff]  }
 0x130   :  { %v875_v34 = vld [vmem:[#allocation5] ss:$0 sm:$0xff] }
 0x132   :  { %969 = vmatpush3.bf16.msra.mxu1 %v1047_v27 }
 0x133   :  { %970 = vmatprep.subr.bf16.mxu1 %v1217_v6 }
 0x136   :  { %971 = vmatpush3.bf16.msra.mxu1 %v1048_v28 }
 0x137   :  { %972 = vmatprep.subr.bf16.mxu1 %v1217_v6 }
 0x13a   :  { %973 = vmatpush3.bf16.msra.mxu1 %v1049_v29 }
 0x13b   :  { %974 = vmatprep.subr.bf16.mxu1 %v1217_v6 }
 0x13e   :  { %975 = vmatpush3.bf16.msra.mxu1 %v1050_v30 }
 0x13f   :  { %976 = vmatprep.subr.bf16.mxu1 %v1217_v6 }
 0x142   :  { %977 = vmatpush3.bf16.msra.mxu1 %v1051_v31 }
 0x143   :  { %978 = vmatprep.subr.bf16.mxu1 %v1217_v6 }
 0x146   :  { %979 = vmatpush3.bf16.msra.mxu1 %v1052_v32 }
 0x147   :  { %980 = vmatprep.subr.bf16.mxu1 %v1217_v6 }
 0x14a   :  { %981 = vmatpush3.bf16.msra.mxu1 %v1053_v33 }
 0x14d   :  { %983 = vmatmul.mubr.bf16.vlgmr.msra.gmra.mxu1 %v396_v25 }
 0x20d   :  { %v506_v35 = vpop.f32.mrf.mxu1 }
 0x20e   :  { %v507_v37 = vadd.f32 %v875_v34, %v506_v35 }
 0x20f   :  { %v984_v36 = vpop.f32.mrf.mxu1 }
 0x210   :  { %v513_v41 = vmax.f32 %v507_v37, 0.0 }
 0x211   :  { %v509_v38 = vpop.f32.mrf.mxu1 }
 0x212   :  { %v510_v39 = vadd.f32 %v875_v34, %v509_v38 }
 0x213   :  { %v985_v40 = vpop.f32.mrf.mxu1 }
 0x214   :  { %v514_v42 = vmax.f32 %v510_v39, 0.0 }
 0x216   :  { %v515_v43 = vpack.c.bf16 %v514_v42, %v513_v41 }
 0x217   :  { %1200 = dma.done.wait [#allocation10 + $0x4], 1024 }
 0x218   :  { %1201 = vsyncadd [#allocation10 + $0x4], 4294966272 }
 0x219   :  { %1202 = dma.done.wait [#allocation10 + $0x5], 16 }
 0x21a   :  { %1203 = vsyncadd [#allocation10 + $0x5], 4294967280  ;;  %986 = vmatprep.subr.bf16.mxu0 %v1217_v6  ;;  %1002 = vmatprep.mubr.msk.bf16.mxu0 %vm1218_vm0, %v1217_v6  ;;  %v1054_v44 = vld [vmem:[#allocation6 + $0x38] sm:$0xff]   ;;  %v1055_v45 = vld [vmem:[#allocation6 + $0x30] sm:$0xff]  }
 0x21b   :  { %987 = vmatpush3.bf16.msra.mxu0 %v1054_v44  ;;  %v1056_v46 = vld [vmem:[#allocation6 + $0x28] sm:$0xff]   ;;  %v1057_v47 = vld [vmem:[#allocation6 + $0x20] sm:$0xff]   ;;  %v1058_v48 = vld [vmem:[#allocation6 + $0x18] sm:$0xff]  }
 0x21c   :  { %988 = vmatprep.subr.bf16.mxu0 %v1217_v6  ;;  %v1059_v49 = vld [vmem:[#allocation6 + $0x10] sm:$0xff]   ;;  %v1060_v50 = vld [vmem:[#allocation6 + $0x8] sm:$0xff]   ;;  %v1061_v51 = vld [vmem:[#allocation6] sm:$0xff]  }
 0x21d   :  { %v884_v52 = vld [vmem:[#allocation7] ss:$0 sm:$0xff] }
 0x21f   :  { %989 = vmatpush3.bf16.msra.mxu0 %v1055_v45 }
 0x220   :  { %990 = vmatprep.subr.bf16.mxu0 %v1217_v6 }
 0x223   :  { %991 = vmatpush3.bf16.msra.mxu0 %v1056_v46 }
 0x224   :  { %992 = vmatprep.subr.bf16.mxu0 %v1217_v6 }
 0x227   :  { %993 = vmatpush3.bf16.msra.mxu0 %v1057_v47 }
 0x228   :  { %994 = vmatprep.subr.bf16.mxu0 %v1217_v6 }
 0x22b   :  { %995 = vmatpush3.bf16.msra.mxu0 %v1058_v48 }
 0x22c   :  { %996 = vmatprep.subr.bf16.mxu0 %v1217_v6 }
 0x22f   :  { %997 = vmatpush3.bf16.msra.mxu0 %v1059_v49 }
 0x230   :  { %998 = vmatprep.subr.bf16.mxu0 %v1217_v6 }
 0x233   :  { %999 = vmatpush3.bf16.msra.mxu0 %v1060_v50 }
 0x234   :  { %1000 = vmatprep.subr.bf16.mxu0 %v1217_v6 }
 0x237   :  { %1001 = vmatpush3.bf16.msra.mxu0 %v1061_v51 }
 0x23a   :  { %1003 = vmatmul.mubr.bf16.vlgmr.msra.gmra.mxu0 %v515_v43 }
 0x2fa   :  { %v625_v53 = vpop.f32.mrf.mxu0 }
 0x2fb   :  { %v626_v55 = vadd.f32 %v884_v52, %v625_v53 }
 0x2fc   :  { %v1004_v54 = vpop.f32.mrf.mxu0 }
 0x2fd   :  { %v632_v59 = vmax.f32 %v626_v55, 0.0 }
 0x2fe   :  { %v628_v56 = vpop.f32.mrf.mxu0 }
 0x2ff   :  { %v629_v57 = vadd.f32 %v884_v52, %v628_v56 }
 0x300   :  { %v1005_v58 = vpop.f32.mrf.mxu0 }
 0x301   :  { %v633_v60 = vmax.f32 %v629_v57, 0.0 }
 0x303   :  { %v634_v61 = vpack.c.bf16 %v633_v60, %v632_v59 }
 0x304   :  { %1204 = dma.done.wait [#allocation10 + $0x6], 1024 }
 0x305   :  { %1205 = vsyncadd [#allocation10 + $0x6], 4294966272 }
 0x306   :  { %1206 = dma.done.wait [#allocation10 + $0x7], 16 }
 0x307   :  { %1207 = vsyncadd [#allocation10 + $0x7], 4294967280  ;;  %1006 = vmatprep.subr.bf16.mxu1 %v1217_v6  ;;  %1022 = vmatprep.mubr.msk.bf16.mxu1 %vm1218_vm0, %v1217_v6  ;;  %v1062_v62 = vld [vmem:[#allocation8 + $0x38] sm:$0xff]   ;;  %v1063_v63 = vld [vmem:[#allocation8 + $0x30] sm:$0xff]   ;;  %s1219_s5 = smov [#allocation14]  }
 0x308   :  { %1007 = vmatpush3.bf16.msra.mxu1 %v1062_v62  ;;  %v1064_v0 = vld [vmem:[#allocation8 + $0x28] sm:$0xff]   ;;  %v1065_v1 = vld [vmem:[#allocation8 + $0x20] sm:$0xff]   ;;  %v1066_v2 = vld [vmem:[#allocation8 + $0x18] sm:$0xff]   ;;  %s758_s7 = sshll.u32 %s1219_s5, 4  ;;  %s759_s7 = int_to_ptr.vmem [resolvable:$true] %s758_s7 }
 0x309   :  { %1008 = vmatprep.subr.bf16.mxu1 %v1217_v6  ;;  %v1067_v3 = vld [vmem:[#allocation8 + $0x10] sm:$0xff]   ;;  %v1068_v4 = vld [vmem:[#allocation8 + $0x8] sm:$0xff]   ;;  %v1069_v5 = vld [vmem:[#allocation8] sm:$0xff]   ;;  %s1170_s8 = scalar_lea.vmem %s759_s7, 256  ;;  %p1175_p12 = scmp.lt.s32.totalorder %s759_s7, %s759_s7 }
 0x30a   :  { %v893_v7 = vld [vmem:[#allocation9] ss:$0 sm:$0xff]  ;;  %p1171_p11 = scmp.ne.s32.totalorder %s759_s7, %s1170_s8  ;;  %p1176_p13 = scmp.lt.s32.totalorder %s1170_s8, %s1170_s8 }
 0x30c   :  { %1009 = vmatpush3.bf16.msra.mxu1 %v1063_v63  ;;  %p1177_p0 = por %p1176_p13, %p1175_p12 }
 0x30d   :  { %1010 = vmatprep.subr.bf16.mxu1 %v1217_v6 }
 0x30e   :  { %p1178_p1 = pnand %p1177_p0, %p1171_p11 }
 0x310   :  { %1011 = vmatpush3.bf16.msra.mxu1 %v1064_v0 }
 0x311   :  { %1012 = vmatprep.subr.bf16.mxu1 %v1217_v6 }
 0x314   :  { %1013 = vmatpush3.bf16.msra.mxu1 %v1065_v1 }
 0x315   :  { %1014 = vmatprep.subr.bf16.mxu1 %v1217_v6 }
 0x318   :  { %1015 = vmatpush3.bf16.msra.mxu1 %v1066_v2 }
 0x319   :  { %1016 = vmatprep.subr.bf16.mxu1 %v1217_v6 }
 0x31c   :  { %1017 = vmatpush3.bf16.msra.mxu1 %v1067_v3 }
 0x31d   :  { %1018 = vmatprep.subr.bf16.mxu1 %v1217_v6 }
 0x320   :  { %1019 = vmatpush3.bf16.msra.mxu1 %v1068_v4 }
 0x321   :  { %1020 = vmatprep.subr.bf16.mxu1 %v1217_v6 }
 0x324   :  { %1021 = vmatpush3.bf16.msra.mxu1 %v1069_v5 }
 0x327   :  { %1023 = vmatmul.mubr.bf16.vlgmr.msra.gmra.mxu1 %v634_v61 }
 0x3e7   :  { %v744_v8 = vpop.f32.mrf.mxu1 }
 0x3e8   :  { %v745_v9 = vadd.f32 %v893_v7, %v744_v8 }
 0x3e9   :  { %v1024_v10 = vpop.f32.mrf.mxu1 }
 0x3ea   :  { %751 = vst [vmem:[#allocation14] sm:$0xff] %v745_v9 }
 0x3eb   :  { %v747_v11 = vpop.f32.mrf.mxu1 }
 0x3ec   :  { %v748_v12 = vadd.f32 %v893_v7, %v747_v11 }
 0x3ed   :  { %v1025_v13 = vpop.f32.mrf.mxu1 }
 0x3ee   :  { %752 = vst [vmem:[#allocation14 + $0x8] sm:$0xff] %v748_v12 }
 0x3ef   :  { %1181 = shalt.err (!%p1178_p1)
}
 0x3f0   :  { %s1220_s17 = smov 128   ;;  %s1221_s18 = smov 8  }
 0x3f1   :  { %764 = dma.vmem_to_hbm [thread:$0]  %s759_s7, 256, %s1351_s9, [#allocation13], %s1220_s17, %s1220_s17, %s1221_s18  }
 0x3f2   :  { %1208 = dma.done.wait [#allocation13], 256  }
 0x3f3   :  { %1209 = vsyncadd [#allocation13], 4294967040 }
 0x3f4   :  { %768 = vsyncpa [#allocation12], 1 }
 0x3f5   :  { %769 = vsyncpa [#allocation13], 1 }
 0x3f6   :  { %770 = vsyncmov [#allocation10] }
 0x3f9   :  { %s771_s21 = vpop.sfrf %770 }
 0x3fa   :  { %p902_p2 = scmp.ne.s32.totalorder %s771_s21, 0 }
 0x3fc   :  { %775 = shalt.err (%p902_p2)  }
 0x3fd   :  { %777 = vsyncmov [#allocation10 + $0x1] }
 0x400   :  { %s778_s22 = vpop.sfrf %777 }
 0x401   :  { %p903_p3 = scmp.ne.s32.totalorder %s778_s22, 0 }
 0x403   :  { %782 = shalt.err (%p903_p3)  }
 0x404   :  { %784 = vsyncmov [#allocation10 + $0x2] }
 0x407   :  { %s785_s0 = vpop.sfrf %784 }
 0x408   :  { %p904_p4 = scmp.ne.s32.totalorder %s785_s0, 0 }
 0x40a   :  { %789 = shalt.err (%p904_p4)  }
 0x40b   :  { %791 = vsyncmov [#allocation10 + $0x3] }
 0x40e   :  { %s792_s23 = vpop.sfrf %791 }
 0x40f   :  { %p905_p5 = scmp.ne.s32.totalorder %s792_s23, 0 }
 0x411   :  { %796 = shalt.err (%p905_p5)  }
 0x412   :  { %798 = vsyncmov [#allocation10 + $0x4] }
 0x415   :  { %s799_s9 = vpop.sfrf %798 }
 0x416   :  { %p906_p6 = scmp.ne.s32.totalorder %s799_s9, 0 }
 0x418   :  { %803 = shalt.err (%p906_p6)  }
 0x419   :  { %805 = vsyncmov [#allocation10 + $0x5] }
 0x41c   :  { %s806_s24 = vpop.sfrf %805 }
 0x41d   :  { %p907_p7 = scmp.ne.s32.totalorder %s806_s24, 0 }
 0x41f   :  { %810 = shalt.err (%p907_p7)  }
 0x420   :  { %812 = vsyncmov [#allocation10 + $0x6] }
 0x423   :  { %s813_s25 = vpop.sfrf %812 }
 0x424   :  { %p908_p8 = scmp.ne.s32.totalorder %s813_s25, 0 }
 0x426   :  { %817 = shalt.err (%p908_p8)  }
 0x427   :  { %819 = vsyncmov [#allocation10 + $0x7] }
 0x42a   :  { %s820_s26 = vpop.sfrf %819 }
 0x42b   :  { %p909_p9 = scmp.ne.s32.totalorder %s820_s26, 0 }
 0x42d   :  { %824 = shalt.err (%p909_p9)  }

</bundles_post_ra>
